<compile_context>
chip_gen: v7x
topology: tpu7x:2x2x1
jax: 0.10.0
libtpu: 0.0.40
codegen_flags: <defaults>
</compile_context>

<pallas_src>
import numpy as np
import jax
import jax.numpy as jnp
from jax.experimental import pallas as pl
from jax.experimental.pallas import tpu as pltpu


def _round_up(n: int, m: int) -> int:
    return ((n + m - 1) // m) * m


def _encoder_kernel(x_ref, w1_ref, b1_ref, w2_ref, b2_ref, w3_ref, b3_ref,
                    w4_ref, b4_ref, cmask_ref, o_ref):
    """Fused 4-layer MLP + exact control-column pass-through for one batch tile.

    Weights are bf16 (MXU native); activations are cast to bf16 per dot with
    f32 accumulation.  Biases, ReLUs and `x * cmask` stay in f32, so the
    control columns of the output equal x exactly.  The column gather/scatter
    of the original forward is pre-folded into zero rows/columns of W1/W4.
    """
    x = x_ref[...]                                          # (tb, nxny) f32
    h = jnp.dot(x.astype(jnp.bfloat16), w1_ref[...],
                preferred_element_type=jnp.float32) + b1_ref[...]
    h = jnp.maximum(h, 0.0)
    h = jnp.dot(h.astype(jnp.bfloat16), w2_ref[...],
                preferred_element_type=jnp.float32) + b2_ref[...]
    h = jnp.maximum(h, 0.0)
    h = jnp.dot(h.astype(jnp.bfloat16), w3_ref[...],
                preferred_element_type=jnp.float32) + b3_ref[...]
    h = jnp.maximum(h, 0.0)
    y = jnp.dot(h.astype(jnp.bfloat16), w4_ref[...],
                preferred_element_type=jnp.float32) + b4_ref[...]
    y = y + x * cmask_ref[...]          # exact pass-through of control columns
    o_ref[...] = y.astype(o_ref.dtype)


def _resident_spec(shape):
    # Whole-array block, same block index every grid step -> loaded once,
    # stays resident in VMEM across the batch loop.
    return pl.BlockSpec(shape, lambda i: tuple(0 for _ in shape))


def encoder_forward_pallas(x, packed, P, tb=256):
    """x: (B, nxny) f32 -> (B, P) f32 via one fused pallas_call (no XLA glue)."""
    w1p, b1p, w2p, b2p, w3p, b3p, w4p, b4p, cmask = packed
    B, d_in = x.shape
    hp = w1p.shape[1]

    # tb guidance: v5e/v6e (1 TensorCore) -> tb = B (single grid step) is best;
    # v7x (2 TCs) -> keep >= 2 grid steps so both cores are used.
    tb = min(tb, B)
    grid = (pl.cdiv(B, tb),)

    return pl.pallas_call(
        _encoder_kernel,
        out_shape=jax.ShapeDtypeStruct((B, P), jnp.float32),
        grid_spec=pltpu.PrefetchScalarGridSpec(
            num_scalar_prefetch=0,
            grid=grid,
            in_specs=[
                # x block is (tb, d_in): d_in (=64) equals the full array dim,
                # so the (8,128) lane rule does not apply -> no pad needed.
                pl.BlockSpec((tb, d_in), lambda i: (i, 0)),
                _resident_spec((d_in, hp)), _resident_spec((1, hp)),   # W1, b1
                _resident_spec((hp, hp)),   _resident_spec((1, hp)),   # W2, b2
                _resident_spec((hp, hp)),   _resident_spec((1, hp)),   # W3, b3
                _resident_spec((hp, P)),    _resident_spec((1, P)),    # W4, b4
                _resident_spec((1, d_in)),                             # cmask
            ],
            out_specs=pl.BlockSpec((tb, P), lambda i: (i, 0)),
        ),
        compiler_params=pltpu.CompilerParams(
            dimension_semantics=("parallel",),   # batch steps shard across v7x's 2 TCs
            vmem_limit_bytes=32 * 1024 * 1024,
        ),
    )(x, w1p, b1p, w2p, b2p, w3p, b3p, w4p, b4p, cmask)


class EncoderPallas:
    """JAX/Pallas port of the PyTorch Encoder module (single fused TPU kernel)."""

    def __init__(self, nxny, M, hidden_dim, P, control_indices, key, tb=256):
        assert P == nxny, "original forward's boolean-mask scatter requires P == nxny"
        self.nxny, self.M, self.P, self.hidden_dim = nxny, M, P, hidden_dim
        self.tb = tb

        ci = np.asarray(control_indices, dtype=np.int64)
        self.control_indices = ci
        mask = np.ones(nxny, dtype=bool)
        mask[ci] = False
        nci = np.nonzero(mask)[0]
        self.noncontrol_indices = nci

        # ---- raw parameters: PyTorch nn.Linear default init, stored (in, out).
        dims = [nxny - M, hidden_dim, hidden_dim, hidden_dim, P - M]
        raw = []
        for li in range(4):
            fan_in, fan_out = dims[li], dims[li + 1]
            key, kw, kb = jax.random.split(key, 3)
            bound = 1.0 / np.sqrt(fan_in)
            w = jax.random.uniform(kw, (fan_in, fan_out), jnp.float32, -bound, bound)
            b = jax.random.uniform(kb, (fan_out,), jnp.float32, -bound, bound)
            raw.append((w, b))
        self.raw_params = tuple(raw)

        # ---- pack once at init:
        #  * fold the boolean-mask gather into zero rows of W1 and the scatter
        #    back into pre-placed columns of W4/b4,
        #  * keep x / y at their NATIVE widths -> full-dim blocks, no XLA
        #    pad/slice glue around the kernel,
        #  * zero-pad only the hidden dim to a 128-lane multiple,
        #  * store weights as bf16 (MXU native), biases / cmask as f32.
        dp = nxny                          # native input width (full-dim block)
        hp = _round_up(hidden_dim, 128)    # padded hidden width
        pp = P                             # native output width (full-dim block)
        H = hidden_dim

        (w1, b1), (w2, b2), (w3, b3), (w4, b4) = [
            (np.asarray(w, np.float32), np.asarray(b, np.float32)) for (w, b) in raw]

        w1p = np.zeros((dp, hp), np.float32); w1p[nci, :H] = w1    # ci rows = 0
        b1p = np.zeros((1, hp), np.float32);  b1p[0, :H] = b1
        w2p = np.zeros((hp, hp), np.float32); w2p[:H, :H] = w2
        b2p = np.zeros((1, hp), np.float32);  b2p[0, :H] = b2
        w3p = np.zeros((hp, hp), np.float32); w3p[:H, :H] = w3
        b3p = np.zeros((1, hp), np.float32);  b3p[0, :H] = b3
        w4p = np.zeros((hp, pp), np.float32); w4p[:H, nci] = w4    # scatter folded in
        b4p = np.zeros((1, pp), np.float32);  b4p[0, nci] = b4
        cmask = np.zeros((1, dp), np.float32); cmask[0, ci] = 1.0  # control pass-through

        self.packed = (
            jnp.asarray(w1p, jnp.bfloat16), jnp.asarray(b1p),
            jnp.asarray(w2p, jnp.bfloat16), jnp.asarray(b2p),
            jnp.asarray(w3p, jnp.bfloat16), jnp.asarray(b3p),
            jnp.asarray(w4p, jnp.bfloat16), jnp.asarray(b4p),
            jnp.asarray(cmask),
        )

        self._fwd = jax.jit(
            lambda xx: encoder_forward_pallas(xx, self.packed, self.P, tb=self.tb))

    def __call__(self, x):
        # x: (B, nxny) float32 -> (B, P) float32
        return self._fwd(x)

    # Pure-JAX f32 reference (no Pallas), mirroring the PyTorch forward exactly.
    def reference(self, x):
        (w1, b1), (w2, b2), (w3, b3), (w4, b4) = self.raw_params
        nci = jnp.asarray(self.noncontrol_indices, jnp.int32)
        ci = jnp.asarray(self.control_indices, jnp.int32)
        h = x[:, nci]
        h = jnp.maximum(h @ w1 + b1, 0.0)
        h = jnp.maximum(h @ w2 + b2, 0.0)
        h = jnp.maximum(h @ w3 + b3, 0.0)
        out = h @ w4 + b4
        y = jnp.zeros((x.shape[0], self.P), x.dtype)
        y = y.at[:, ci].set(x[:, ci])
        y = y.at[:, nci].set(out)
        return y

    # Same structure with bf16 matmul operands / f32 accumulation — the exact
    # arithmetic the kernel performs (used for the tight-tolerance check).
    def reference_bf16(self, x):
        (w1, b1), (w2, b2), (w3, b3), (w4, b4) = self.raw_params
        nci = jnp.asarray(self.noncontrol_indices, jnp.int32)
        ci = jnp.asarray(self.control_indices, jnp.int32)

        def mm(a, w):
            return jnp.dot(a.astype(jnp.bfloat16), w.astype(jnp.bfloat16),
                           preferred_element_type=jnp.float32)

        h = x[:, nci]
        h = jnp.maximum(mm(h, w1) + b1, 0.0)
        h = jnp.maximum(mm(h, w2) + b2, 0.0)
        h = jnp.maximum(mm(h, w3) + b3, 0.0)
        out = mm(h, w4) + b4
        y = jnp.zeros((x.shape[0], self.P), x.dtype)
        y = y.at[:, ci].set(x[:, ci])
        y = y.at[:, nci].set(out)
        return y


if __name__ == "__main__":
    # 8x8 spatial grid flattened -> nxny = 64 dofs, M = 4 control dofs,
    # hidden_dim = 32, P = nxny = 64.
    nxny = 64
    M = 4
    hidden_dim = 32
    P = 64
    batch = 512                  # tb=256 -> grid (2,): both v7x TCs busy;
                                 # on single-TC v5e/v6e pass tb=batch instead.
    control_indices = np.array([3, 17, 34, 55])

    key = jax.random.PRNGKey(0)
    key, k_init, k_x = jax.random.split(key, 3)

    enc = EncoderPallas(nxny, M, hidden_dim, P, control_indices, k_init, tb=256)

    x = jax.random.normal(k_x, (batch, nxny), dtype=jnp.float32)

    y = jax.block_until_ready(enc(x))

    # Tight check against a JAX reference using the same bf16-operand math.
    y_bf = jax.block_until_ready(enc.reference_bf16(x))
    np.testing.assert_allclose(np.asarray(y), np.asarray(y_bf), rtol=2e-3, atol=2e-4)

    # Loose check against the exact f32 PyTorch-equivalent reference (bf16
    # matmul operands perturb the MLP columns by well under 1% through 4 layers).
    y_ref = jax.block_until_ready(enc.reference(x))
    np.testing.assert_allclose(np.asarray(y), np.asarray(y_ref), rtol=5e-2, atol=1e-2)

    # Control columns must pass through bit-exactly (f32 cmask path, not MXU).
    np.testing.assert_array_equal(np.asarray(y)[:, control_indices],
                                  np.asarray(x)[:, control_indices])

    print("KERNEL_OK")
</pallas_src>

<mosaic_0001>
module attributes {stable_mosaic.version = 11 : i64} {
  func.func @_encoder_kernel(%arg0: i32, %arg1: memref<256x64xf32, #tpu.memory_space<vmem>>, %arg2: memref<64x128xbf16, #tpu.memory_space<vmem>>, %arg3: memref<1x128xf32, #tpu.memory_space<vmem>>, %arg4: memref<128x128xbf16, #tpu.memory_space<vmem>>, %arg5: memref<1x128xf32, #tpu.memory_space<vmem>>, %arg6: memref<128x128xbf16, #tpu.memory_space<vmem>>, %arg7: memref<1x128xf32, #tpu.memory_space<vmem>>, %arg8: memref<128x64xbf16, #tpu.memory_space<vmem>>, %arg9: memref<1x64xf32, #tpu.memory_space<vmem>>, %arg10: memref<1x64xf32, #tpu.memory_space<vmem>>, %arg11: memref<256x64xf32, #tpu.memory_space<vmem>>) attributes {dimension_semantics = [#tpu.dimension_semantics<parallel>], iteration_bounds = array<i64: 2>, scalar_prefetch = 0 : i64, scratch_operands = 0 : i64, tpu.core_type = #tpu.core_type<tc>, window_params = [{transform_indices = @transform_0, window_bounds = array<i64: 256, 64>}, {pipeline_mode = #tpu.pipeline_mode<synchronous>, transform_indices = @transform_1, window_bounds = array<i64: 64, 128>}, {pipeline_mode = #tpu.pipeline_mode<synchronous>, transform_indices = @transform_2, window_bounds = array<i64: 1, 128>}, {pipeline_mode = #tpu.pipeline_mode<synchronous>, transform_indices = @transform_3, window_bounds = array<i64: 128, 128>}, {pipeline_mode = #tpu.pipeline_mode<synchronous>, transform_indices = @transform_4, window_bounds = array<i64: 1, 128>}, {pipeline_mode = #tpu.pipeline_mode<synchronous>, transform_indices = @transform_5, window_bounds = array<i64: 128, 128>}, {pipeline_mode = #tpu.pipeline_mode<synchronous>, transform_indices = @transform_6, window_bounds = array<i64: 1, 128>}, {pipeline_mode = #tpu.pipeline_mode<synchronous>, transform_indices = @transform_7, window_bounds = array<i64: 128, 64>}, {pipeline_mode = #tpu.pipeline_mode<synchronous>, transform_indices = @transform_8, window_bounds = array<i64: 1, 64>}, {pipeline_mode = #tpu.pipeline_mode<synchronous>, transform_indices = @transform_9, window_bounds = array<i64: 1, 64>}, {transform_indices = @transform_10, window_bounds = array<i64: 256, 64>}]} {
    %c0 = arith.constant 0 : index
    %c0_0 = arith.constant 0 : index
    %0 = vector.load %arg1[%c0, %c0_0] : memref<256x64xf32, #tpu.memory_space<vmem>>, vector<256x64xf32>
    %1 = arith.truncf %0 : vector<256x64xf32> to vector<256x64xbf16>
    %c0_1 = arith.constant 0 : index
    %c0_2 = arith.constant 0 : index
    %2 = vector.load %arg2[%c0_1, %c0_2] : memref<64x128xbf16, #tpu.memory_space<vmem>>, vector<64x128xbf16>
    %cst = arith.constant dense<0.000000e+00> : vector<256x128xf32>
    %3 = tpu.matmul %1, %2, %cst {dimension_numbers = #tpu.dot_dimension_numbers<[1], [0], [0], [1], [0, 0, 1, 1], [], []>} : vector<256x64xbf16>, vector<64x128xbf16>, vector<256x128xf32> -> vector<256x128xf32>
    %c0_3 = arith.constant 0 : index
    %c0_4 = arith.constant 0 : index
    %4 = vector.load %arg3[%c0_3, %c0_4] : memref<1x128xf32, #tpu.memory_space<vmem>>, vector<1x128xf32>
    %5 = vector.broadcast %4 : vector<1x128xf32> to vector<256x128xf32>
    %6 = arith.addf %3, %5 : vector<256x128xf32>
    %cst_5 = arith.constant 0.000000e+00 : f32
    %7 = vector.broadcast %cst_5 : f32 to vector<256x128xf32>
    %8 = arith.maximumf %6, %7 : vector<256x128xf32>
    %9 = arith.truncf %8 : vector<256x128xf32> to vector<256x128xbf16>
    %c0_6 = arith.constant 0 : index
    %c0_7 = arith.constant 0 : index
    %10 = vector.load %arg4[%c0_6, %c0_7] : memref<128x128xbf16, #tpu.memory_space<vmem>>, vector<128x128xbf16>
    %cst_8 = arith.constant dense<0.000000e+00> : vector<256x128xf32>
    %11 = tpu.matmul %9, %10, %cst_8 {dimension_numbers = #tpu.dot_dimension_numbers<[1], [0], [0], [1], [0, 0, 1, 1], [], []>} : vector<256x128xbf16>, vector<128x128xbf16>, vector<256x128xf32> -> vector<256x128xf32>
    %c0_9 = arith.constant 0 : index
    %c0_10 = arith.constant 0 : index
    %12 = vector.load %arg5[%c0_9, %c0_10] : memref<1x128xf32, #tpu.memory_space<vmem>>, vector<1x128xf32>
    %13 = vector.broadcast %12 : vector<1x128xf32> to vector<256x128xf32>
    %14 = arith.addf %11, %13 : vector<256x128xf32>
    %cst_11 = arith.constant 0.000000e+00 : f32
    %15 = vector.broadcast %cst_11 : f32 to vector<256x128xf32>
    %16 = arith.maximumf %14, %15 : vector<256x128xf32>
    %17 = arith.truncf %16 : vector<256x128xf32> to vector<256x128xbf16>
    %c0_12 = arith.constant 0 : index
    %c0_13 = arith.constant 0 : index
    %18 = vector.load %arg6[%c0_12, %c0_13] : memref<128x128xbf16, #tpu.memory_space<vmem>>, vector<128x128xbf16>
    %cst_14 = arith.constant dense<0.000000e+00> : vector<256x128xf32>
    %19 = tpu.matmul %17, %18, %cst_14 {dimension_numbers = #tpu.dot_dimension_numbers<[1], [0], [0], [1], [0, 0, 1, 1], [], []>} : vector<256x128xbf16>, vector<128x128xbf16>, vector<256x128xf32> -> vector<256x128xf32>
    %c0_15 = arith.constant 0 : index
    %c0_16 = arith.constant 0 : index
    %20 = vector.load %arg7[%c0_15, %c0_16] : memref<1x128xf32, #tpu.memory_space<vmem>>, vector<1x128xf32>
    %21 = vector.broadcast %20 : vector<1x128xf32> to vector<256x128xf32>
    %22 = arith.addf %19, %21 : vector<256x128xf32>
    %cst_17 = arith.constant 0.000000e+00 : f32
    %23 = vector.broadcast %cst_17 : f32 to vector<256x128xf32>
    %24 = arith.maximumf %22, %23 : vector<256x128xf32>
    %25 = arith.truncf %24 : vector<256x128xf32> to vector<256x128xbf16>
    %c0_18 = arith.constant 0 : index
    %c0_19 = arith.constant 0 : index
    %26 = vector.load %arg8[%c0_18, %c0_19] : memref<128x64xbf16, #tpu.memory_space<vmem>>, vector<128x64xbf16>
    %cst_20 = arith.constant dense<0.000000e+00> : vector<256x64xf32>
    %27 = tpu.matmul %25, %26, %cst_20 {dimension_numbers = #tpu.dot_dimension_numbers<[1], [0], [0], [1], [0, 0, 1, 1], [], []>} : vector<256x128xbf16>, vector<128x64xbf16>, vector<256x64xf32> -> vector<256x64xf32>
    %c0_21 = arith.constant 0 : index
    %c0_22 = arith.constant 0 : index
    %28 = vector.load %arg9[%c0_21, %c0_22] : memref<1x64xf32, #tpu.memory_space<vmem>>, vector<1x64xf32>
    %29 = vector.broadcast %28 : vector<1x64xf32> to vector<256x64xf32>
    %30 = arith.addf %27, %29 : vector<256x64xf32>
    %c0_23 = arith.constant 0 : index
    %c0_24 = arith.constant 0 : index
    %31 = vector.load %arg10[%c0_23, %c0_24] : memref<1x64xf32, #tpu.memory_space<vmem>>, vector<1x64xf32>
    %32 = vector.broadcast %31 : vector<1x64xf32> to vector<256x64xf32>
    %33 = arith.mulf %0, %32 : vector<256x64xf32>
    %34 = arith.addf %30, %33 : vector<256x64xf32>
    %c0_25 = arith.constant 0 : index
    %c0_26 = arith.constant 0 : index
    %35 = vector.load %arg11[%c0_25, %c0_26] : memref<256x64xf32, #tpu.memory_space<vmem>>, vector<256x64xf32>
    tpu.vector_store %arg11[%c0_25, %c0_26], %34 {strides = array<i32>} : memref<256x64xf32, #tpu.memory_space<vmem>>, vector<256x64xf32>,
    return
  }
  func.func @transform_0(%arg0: i32) -> (i32, i32) {
    %c0_i32 = arith.constant 0 : i32
    %c0_i32_0 = arith.constant 0 : i32
    return %arg0, %c0_i32 : i32, i32
  }
  func.func @transform_1(%arg0: i32) -> (i32, i32) {
    %c0_i32 = arith.constant 0 : i32
    %c0_i32_0 = arith.constant 0 : i32
    %c0_i32_1 = arith.constant 0 : i32
    return %c0_i32, %c0_i32_0 : i32, i32
  }
  func.func @transform_2(%arg0: i32) -> (i32, i32) {
    %c0_i32 = arith.constant 0 : i32
    %c0_i32_0 = arith.constant 0 : i32
    %c0_i32_1 = arith.constant 0 : i32
    return %c0_i32, %c0_i32_0 : i32, i32
  }
  func.func @transform_3(%arg0: i32) -> (i32, i32) {
    %c0_i32 = arith.constant 0 : i32
    %c0_i32_0 = arith.constant 0 : i32
    %c0_i32_1 = arith.constant 0 : i32
    return %c0_i32, %c0_i32_0 : i32, i32
  }
  func.func @transform_4(%arg0: i32) -> (i32, i32) {
    %c0_i32 = arith.constant 0 : i32
    %c0_i32_0 = arith.constant 0 : i32
    %c0_i32_1 = arith.constant 0 : i32
    return %c0_i32, %c0_i32_0 : i32, i32
  }
  func.func @transform_5(%arg0: i32) -> (i32, i32) {
    %c0_i32 = arith.constant 0 : i32
    %c0_i32_0 = arith.constant 0 : i32
    %c0_i32_1 = arith.constant 0 : i32
    return %c0_i32, %c0_i32_0 : i32, i32
  }
  func.func @transform_6(%arg0: i32) -> (i32, i32) {
    %c0_i32 = arith.constant 0 : i32
    %c0_i32_0 = arith.constant 0 : i32
    %c0_i32_1 = arith.constant 0 : i32
    return %c0_i32, %c0_i32_0 : i32, i32
  }
  func.func @transform_7(%arg0: i32) -> (i32, i32) {
    %c0_i32 = arith.constant 0 : i32
    %c0_i32_0 = arith.constant 0 : i32
    %c0_i32_1 = arith.constant 0 : i32
    return %c0_i32, %c0_i32_0 : i32, i32
  }
  func.func @transform_8(%arg0: i32) -> (i32, i32) {
    %c0_i32 = arith.constant 0 : i32
    %c0_i32_0 = arith.constant 0 : i32
    %c0_i32_1 = arith.constant 0 : i32
    return %c0_i32, %c0_i32_0 : i32, i32
  }
  func.func @transform_9(%arg0: i32) -> (i32, i32) {
    %c0_i32 = arith.constant 0 : i32
    %c0_i32_0 = arith.constant 0 : i32
    %c0_i32_1 = arith.constant 0 : i32
    return %c0_i32, %c0_i32_0 : i32, i32
  }
  func.func @transform_10(%arg0: i32) -> (i32, i32) {
    %c0_i32 = arith.constant 0 : i32
    %c0_i32_0 = arith.constant 0 : i32
    return %arg0, %c0_i32 : i32, i32
  }
}

</mosaic_0001>

<bundles_post_ra>
// kernel: _lambda_.1
= control target key start
LH: loop header
LB: loop body
LE: loop exit
PB: predicated region body
PF: predicated region fallthrough
CT: control target
= control target key end

     0   :  { %s2143_s13 = smov 0   ;;  %s2602_s0 = inlined_call_operand.vmem [shape: f32[512,64], index: 0, kind: input, shape index: {}]   ;;  %s2603_s1 = inlined_call_operand.vmem [shape: bf16[64,128], index: 1, kind: input, shape index: {}]   ;;  %s2604_s2 = inlined_call_operand.vmem [shape: f32[1,128], index: 2, kind: input, shape index: {}]   ;;  %s2605_s3 = inlined_call_operand.vmem [shape: bf16[128,128], index: 3, kind: input, shape index: {}]   ;;  %s2606_s4 = inlined_call_operand.vmem [shape: f32[1,128], index: 4, kind: input, shape index: {}]   ;;  %s2607_s5 = inlined_call_operand.vmem [shape: bf16[128,128], index: 5, kind: input, shape index: {}]   ;;  %s2608_s6 = inlined_call_operand.vmem [shape: f32[1,128], index: 6, kind: input, shape index: {}]   ;;  %s2609_s7 = inlined_call_operand.vmem [shape: bf16[128,64], index: 7, kind: input, shape index: {}]   ;;  %s2610_s8 = inlined_call_operand.vmem [shape: f32[1,64], index: 8, kind: input, shape index: {}]   ;;  %s2611_s9 = inlined_call_operand.vmem [shape: f32[1,64], index: 9, kind: input, shape index: {}]   ;;  %s2612_s10 = inlined_call_operand.vmem [shape: f32[512,64], index: 10, kind: output, shape index: {}]  }
   0x1 LB: > { %s1660_s14 = sadd.s32 4294967295, %s2086_s13   ;;  %p1664_p0 = scmp.ge.s32.totalorder %s2086_s13, 1  ;;  %s2086_s13 = sphi %s2143_s13, %s20_s13  }
   0x2   : > { %p313_p1 = scmp.lt.s32.totalorder %s2086_s13, 3 }
   0x4   : > { %p314_p2 = pnand %p1664_p0, %p313_p1 }
   0x5   : > { %v2020_v0 = vld [vmem:[%s2603_s1] sm:$0xff] (!%p314_p2)   ;;  %s1665_s17 = sshll.u32 (!%p314_p2), %s1660_s14, 5  ;;  %v2021_v1 = vld [vmem:[%s2603_s1 + $0x8] sm:$0xff] (!%p314_p2)   ;;  %v2022_v2 = vld [vmem:[%s2603_s1 + $0x10] sm:$0xff] (!%p314_p2)   ;;  %vm451_vm0 = vcmask (!%p314_p2), 523264  }
   0x6   : > { %317 = sbr.rel (%p314_p2) target bundleno = 964 (0x3c4), region = 60  ;;  %p352_p3 = scmp.lt.s32.totalorder (!%p314_p2), %s1665_s17, 63  ;;  %1812 = vmatprep.subr.bf16.mxu0 (!%p314_p2), %v2020_v0  ;;  %v2024_v3 = vld [vmem:[%s2605_s3] sm:$0xff] (!%p314_p2)   ;;  %v2025_v4 = vld [vmem:[%s2605_s3 + $0x8] sm:$0xff] (!%p314_p2)   ;;  %v2023_v7 = vld [vmem:[%s2603_s1 + $0x18] sm:$0xff] (!%p314_p2)  }
   0x7   : > { %1813 = vmatpush3.bf16.msra.mxu0 (!%p314_p2), %v2020_v0  ;;  %1852 = vmatprep.subr.bf16.mxu1 (!%p314_p2), %v2024_v3  ;;  %v2026_v17 = vld [vmem:[%s2605_s3 + $0x10] sm:$0xff] (!%p314_p2)   ;;  %v2027_v19 = vld [vmem:[%s2605_s3 + $0x18] sm:$0xff] (!%p314_p2)   ;;  %v2028_v21 = vld [vmem:[%s2605_s3 + $0x20] sm:$0xff] (!%p314_p2)  }
   0x8   : > { %1814 = vmatprep.subr.bf16.mxu0 (!%p314_p2), %v2021_v1  ;;  %1853 = vmatpush3.bf16.msra.mxu1 (!%p314_p2), %v2024_v3  ;;  %v2029_v24 = vld [vmem:[%s2605_s3 + $0x28] sm:$0xff] (!%p314_p2)   ;;  %v2030_v58 = vld [vmem:[%s2605_s3 + $0x30] sm:$0xff] (!%p314_p2)   ;;  %v2031_v59 = vld [vmem:[%s2605_s3 + $0x38] sm:$0xff] (!%p314_p2)  }
   0x9   : > { %1854 = vmatprep.subr.bf16.mxu1 (!%p314_p2), %v2025_v4  ;;  %v2032_v60 = vld [vmem:[%s2607_s5] sm:$0xff] (!%p314_p2)   ;;  %v2033_v61 = vld [vmem:[%s2607_s5 + $0x8] sm:$0xff] (!%p314_p2)   ;;  %v2034_v62 = vld [vmem:[%s2607_s5 + $0x10] sm:$0xff] (!%p314_p2)  }
   0xa   : > { %v2035_v63 = vld [vmem:[%s2607_s5 + $0x18] sm:$0xff] (!%p314_p2)   ;;  %v2036_v0 = vld [vmem:[%s2607_s5 + $0x20] sm:$0xff] (!%p314_p2)  }
   0xb   : > { %1815 = vmatpush3.bf16.msra.mxu0 (!%p314_p2), %v2021_v1  ;;  %v2037_v1 = vld [vmem:[%s2607_s5 + $0x28] sm:$0xff] (!%p314_p2)   ;;  %v2269_v3 = vld [vmem:[%s2604_s2] ss:$0 sm:$0xff] (!%p314_p2) }
   0xc   : > { %1816 = vmatprep.subr.bf16.mxu0 (!%p314_p2), %v2022_v2  ;;  %1855 = vmatpush3.bf16.msra.mxu1 (!%p314_p2), %v2025_v4 }
   0xd   : > { %s2614_s17 = smov (!%p352_p3, %s1665_s17), 63  ;;  %1856 = vmatprep.subr.bf16.mxu1 %v2026_v17 }
   0xe   : > { %s1666_s22 = sshll.u32 %s2614_s17, 3 }
   0xf   : > { %s2171_s27 = scalar_lea.vmem %s2602_s0, %s1666_s22  ;;  %1817 = vmatpush3.bf16.msra.mxu0 %v2022_v2  ;;  %v2038_v2 = vld [vmem:[%s2607_s5 + $0x30] sm:$0xff]   ;;  %s2444_s23 = scalar_lea.vmem %s2612_s10, %s1666_s22 }
  0x10   : > { %v364_v5 = vld [vmem:[%s2171_s27] sm:$0xff]  ;;  %v365_v6 = vld [vmem:[%s2171_s27 + $0x8] sm:$0xff]  ;;  %v366_v9 = vld [vmem:[%s2171_s27 + $0x10] sm:$0xff]  ;;  %1818 = vmatprep.subr.bf16.mxu0 %v2023_v7  ;;  %1857 = vmatpush3.bf16.msra.mxu1 %v2026_v17 }
  0x11   : > { %v396_v8 = vpack.c.bf16 %v365_v6, %v364_v5  ;;  %v367_v10 = vld [vmem:[%s2171_s27 + $0x18] sm:$0xff]  ;;  %v368_v11 = vld [vmem:[%s2171_s27 + $0x20] sm:$0xff]  ;;  %v369_v12 = vld [vmem:[%s2171_s27 + $0x28] sm:$0xff]  ;;  %1858 = vmatprep.subr.bf16.mxu1 %v2027_v19 }
  0x12   : > { %v397_v13 = vpack.c.bf16 %v367_v10, %v366_v9  ;;  %v398_v14 = vpack.c.bf16 %v369_v12, %v368_v11  ;;  %v370_v15 = vld [vmem:[%s2171_s27 + $0x30] sm:$0xff]  ;;  %v371_v16 = vld [vmem:[%s2171_s27 + $0x38] sm:$0xff]  ;;  %v372_v18 = vld [vmem:[%s2171_s27 + $0x40] sm:$0xff] }
  0x13   : > { %1820 = vmatprep.mubr.msk.bf16.mxu0 %vm451_vm0, %v396_v8  ;;  %1819 = vmatpush3.bf16.msra.mxu0 %v2023_v7  ;;  %v373_v20 = vld [vmem:[%s2171_s27 + $0x48] sm:$0xff]  ;;  %v399_v22 = vpack.c.bf16 %v371_v16, %v370_v15  ;;  %v374_v25 = vld [vmem:[%s2171_s27 + $0x50] sm:$0xff]  ;;  %v375_v26 = vld [vmem:[%s2171_s27 + $0x58] sm:$0xff] }
  0x14   : > { %v400_v23 = vpack.c.bf16 %v373_v20, %v372_v18  ;;  %1859 = vmatpush3.bf16.msra.mxu1 %v2027_v19  ;;  %v376_v27 = vld [vmem:[%s2171_s27 + $0x60] sm:$0xff]  ;;  %v377_v28 = vld [vmem:[%s2171_s27 + $0x68] sm:$0xff]  ;;  %v401_v29 = vpack.c.bf16 %v375_v26, %v374_v25  ;;  %v378_v31 = vld [vmem:[%s2171_s27 + $0x70] sm:$0xff]  ;;  %1900 = vmatprep.subr.bf16.mxu0 %v2032_v60 }
  0x15   : > { %1860 = vmatprep.subr.bf16.mxu1 %v2028_v21  ;;  %v402_v30 = vpack.c.bf16 %v377_v28, %v376_v27  ;;  %v379_v32 = vld [vmem:[%s2171_s27 + $0x78] sm:$0xff]  ;;  %v380_v33 = vld [vmem:[%s2171_s27 + $0x80] sm:$0xff]  ;;  %v381_v34 = vld [vmem:[%s2171_s27 + $0x88] sm:$0xff] }
  0x16   : > { %1821 = vmatmul.mubr.msk.bf16.vlgmr.msra.gmra.mrb[0].mxu0 %vm451_vm0, %v397_v13  ;;  %v403_v35 = vpack.c.bf16 %v379_v32, %v378_v31  ;;  %v404_v36 = vpack.c.bf16 %v381_v34, %v380_v33  ;;  %v382_v37 = vld [vmem:[%s2171_s27 + $0x90] sm:$0xff]  ;;  %v383_v38 = vld [vmem:[%s2171_s27 + $0x98] sm:$0xff]  ;;  %v384_v39 = vld [vmem:[%s2171_s27 + $0xa0] sm:$0xff] }
  0x17   : > { %1824 = vmatprep.mubr.msk.bf16.mxu0 %vm451_vm0, %v398_v14  ;;  %v385_v40 = vld [vmem:[%s2171_s27 + $0xa8] sm:$0xff]  ;;  %v405_v41 = vpack.c.bf16 %v383_v38, %v382_v37  ;;  %v386_v43 = vld [vmem:[%s2171_s27 + $0xb0] sm:$0xff]  ;;  %v387_v44 = vld [vmem:[%s2171_s27 + $0xb8] sm:$0xff]  ;;  %1901 = vmatpush3.bf16.msra.mxu0 %v2032_v60 }
  0x18   : > { %1861 = vmatpush3.bf16.msra.mxu1 %v2028_v21  ;;  %v406_v42 = vpack.c.bf16 %v385_v40, %v384_v39  ;;  %v388_v45 = vld [vmem:[%s2171_s27 + $0xc0] sm:$0xff]  ;;  %v389_v46 = vld [vmem:[%s2171_s27 + $0xc8] sm:$0xff]  ;;  %v407_v47 = vpack.c.bf16 %v387_v44, %v386_v43  ;;  %v390_v49 = vld [vmem:[%s2171_s27 + $0xd0] sm:$0xff]  ;;  %1902 = vmatprep.subr.bf16.mxu0 %v2033_v61 }
  0x19   : > { %1862 = vmatprep.subr.bf16.mxu1 %v2029_v24  ;;  %v408_v48 = vpack.c.bf16 %v389_v46, %v388_v45  ;;  %v391_v50 = vld [vmem:[%s2171_s27 + $0xd8] sm:$0xff]  ;;  %v392_v51 = vld [vmem:[%s2171_s27 + $0xe0] sm:$0xff]  ;;  %v393_v52 = vld [vmem:[%s2171_s27 + $0xe8] sm:$0xff] }
  0x1a   : > { %v409_v53 = vpack.c.bf16 %v391_v50, %v390_v49  ;;  %v410_v54 = vpack.c.bf16 %v393_v52, %v392_v51  ;;  %v394_v55 = vld [vmem:[%s2171_s27 + $0xf0] sm:$0xff]  ;;  %v395_v56 = vld [vmem:[%s2171_s27 + $0xf8] sm:$0xff] }
  0x1b   : > { %v411_v57 = vpack.c.bf16 %v395_v56, %v394_v55  ;;  %1903 = vmatpush3.bf16.msra.mxu0 %v2033_v61 }
  0x1c   : > { %1863 = vmatpush3.bf16.msra.mxu1 %v2029_v24  ;;  %1904 = vmatprep.subr.bf16.mxu0 %v2034_v62 }
  0x1d   : > { %1864 = vmatprep.subr.bf16.mxu1 %v2030_v58 }
  0x1e   : > { %1825 = vmatmul.mubr.msk.bf16.gmra.mrb[4].mxu0 %vm451_vm0, %v399_v22 }
  0x1f   : > { %1828 = vmatprep.mubr.msk.bf16.mxu0 %vm451_vm0, %v400_v23  ;;  %1905 = vmatpush3.bf16.msra.mxu0 %v2034_v62 }
  0x20   : > { %1865 = vmatpush3.bf16.msra.mxu1 %v2030_v58  ;;  %1906 = vmatprep.subr.bf16.mxu0 %v2035_v63 }
  0x21   : > { %1866 = vmatprep.subr.bf16.mxu1 %v2031_v59 }
  0x23   : > { %1907 = vmatpush3.bf16.msra.mxu0 %v2035_v63 }
  0x24   : > { %1867 = vmatpush3.bf16.msra.mxu1 %v2031_v59  ;;  %1908 = vmatprep.subr.bf16.mxu0 %v2036_v0 }
  0x26   : > { %1829 = vmatmul.mubr.msk.bf16.gmra.mrb[8].mxu0 %vm451_vm0, %v401_v29 }
  0x27   : > { %1832 = vmatprep.mubr.msk.bf16.mxu0 %vm451_vm0, %v402_v30  ;;  %1909 = vmatpush3.bf16.msra.mxu0 %v2036_v0 }
  0x28   : > { %1910 = vmatprep.subr.bf16.mxu0 %v2037_v1 }
  0x2b   : > { %1911 = vmatpush3.bf16.msra.mxu0 %v2037_v1 }
  0x2c   : > { %1912 = vmatprep.subr.bf16.mxu0 %v2038_v2 }
  0x2e   : > { %1833 = vmatmul.mubr.msk.bf16.gmra.mrb[12].mxu0 %vm451_vm0, %v403_v35 }
  0x2f   : > { %1836 = vmatprep.mubr.msk.bf16.mxu0 %vm451_vm0, %v404_v36  ;;  %1913 = vmatpush3.bf16.msra.mxu0 %v2038_v2 }
  0x36   : > { %1837 = vmatmul.mubr.msk.bf16.gmra.mrb[16].mxu0 %vm451_vm0, %v405_v41 }
  0x37   : > { %1840 = vmatprep.mubr.msk.bf16.mxu0 %vm451_vm0, %v406_v42 }
  0x3e   : > { %1841 = vmatmul.mubr.msk.bf16.gmra.mrb[20].mxu0 %vm451_vm0, %v407_v47 }
  0x3f   : > { %1844 = vmatprep.mubr.msk.bf16.mxu0 %vm451_vm0, %v408_v48 }
  0x46   : > { %1845 = vmatmul.mubr.msk.bf16.gmra.mrb[24].mxu0 %vm451_vm0, %v409_v53 }
  0x47   : > { %1848 = vmatprep.mubr.msk.bf16.mxu0 %vm451_vm0, %v410_v54 }
  0x4e   : > { %1849 = vmatmul.mubr.msk.bf16.gmra.mrb[28].mxu0 %vm451_vm0, %v411_v57 }
  0xe9   : > { %v1822_v4 = vpop.f32.mrb[0].mxu0 }
  0xea   : > { %v543_v5 = vadd.f32 %v1822_v4, %v2269_v3  ;;  %v534_v6 = vpop.f32.mrb[1].mxu0 }
  0xeb   : > { %v535_v7 = vadd.f32 %v2269_v3, %v534_v6  ;;  %v1823_v8 = vpop.f32.mrb[2].mxu0 }
  0xec   : > { %v546_v9 = vadd.f32 %v1823_v8, %v2269_v3  ;;  %v537_v10 = vpop.f32.mrb[3].mxu0  ;;  %v663_v12 = vmax.f32 %v543_v5, 0.0 }
  0xed   : > { %v538_v11 = vadd.f32 %v2269_v3, %v537_v10  ;;  %v661_v14 = vmax.f32 %v535_v7, 0.0 }
  0xee   : > { %v664_v13 = vmax.f32 %v546_v9, 0.0 }
  0xef   : > { %v662_v15 = vmax.f32 %v538_v11, 0.0 }
  0xf0   : > { %v694_v16 = vpack.c.bf16 %v664_v13, %v663_v12 }
  0xf1   : > { %v1826_v17 = vpop.f32.mrb[4].mxu0  ;;  %v693_v18 = vpack.c.bf16 %v662_v15, %v661_v14 }
  0xf2   : > { %v559_v19 = vadd.f32 %v1826_v17, %v2269_v3  ;;  %v550_v20 = vpop.f32.mrb[5].mxu0 }
  0xf3   : > { %v551_v21 = vadd.f32 %v2269_v3, %v550_v20  ;;  %v1827_v22 = vpop.f32.mrb[6].mxu0  ;;  %1868 = vmatprep.mubr.bf16.mxu1 %v693_v18 }
  0xf4   : > { %v562_v23 = vadd.f32 %v1827_v22, %v2269_v3  ;;  %v553_v24 = vpop.f32.mrb[7].mxu0  ;;  %1869 = vmatmul.mubr.bf16.vlgmr.msra.gmra.mrb[0].mxu1 %v694_v16  ;;  %v667_v26 = vmax.f32 %v559_v19, 0.0 }
  0xf5   : > { %v554_v25 = vadd.f32 %v2269_v3, %v553_v24  ;;  %v665_v28 = vmax.f32 %v551_v21, 0.0 }
  0xf6   : > { %v668_v27 = vmax.f32 %v562_v23, 0.0 }
  0xf7   : > { %v666_v29 = vmax.f32 %v554_v25, 0.0 }
  0xf8   : > { %v696_v30 = vpack.c.bf16 %v668_v27, %v667_v26 }
  0xf9   : > { %v695_v31 = vpack.c.bf16 %v666_v29, %v665_v28  ;;  %v1830_v32 = vpop.f32.mrb[8].mxu0 }
  0xfa   : > { %v575_v33 = vadd.f32 %v1830_v32, %v2269_v3  ;;  %v566_v34 = vpop.f32.mrb[9].mxu0 }
  0xfb   : > { %v567_v35 = vadd.f32 %v2269_v3, %v566_v34  ;;  %v1831_v36 = vpop.f32.mrb[10].mxu0  ;;  %1872 = vmatprep.mubr.bf16.mxu1 %v695_v31 }
  0xfc   : > { %v578_v37 = vadd.f32 %v1831_v36, %v2269_v3  ;;  %v569_v38 = vpop.f32.mrb[11].mxu0  ;;  %1873 = vmatmul.mubr.bf16.gmra.mrb[4].mxu1 %v696_v30  ;;  %v671_v40 = vmax.f32 %v575_v33, 0.0 }
  0xfd   : > { %v570_v39 = vadd.f32 %v2269_v3, %v569_v38  ;;  %v669_v42 = vmax.f32 %v567_v35, 0.0 }
  0xfe   : > { %v672_v41 = vmax.f32 %v578_v37, 0.0 }
  0xff   : > { %v670_v43 = vmax.f32 %v570_v39, 0.0 }
 0x100   : > { %v698_v44 = vpack.c.bf16 %v672_v41, %v671_v40 }
 0x101   : > { %v697_v45 = vpack.c.bf16 %v670_v43, %v669_v42  ;;  %v1834_v46 = vpop.f32.mrb[12].mxu0 }
 0x102   : > { %v591_v47 = vadd.f32 %v1834_v46, %v2269_v3  ;;  %v582_v48 = vpop.f32.mrb[13].mxu0 }
 0x103   : > { %v583_v49 = vadd.f32 %v2269_v3, %v582_v48  ;;  %v1835_v50 = vpop.f32.mrb[14].mxu0  ;;  %1876 = vmatprep.mubr.bf16.mxu1 %v697_v45 }
 0x104   : > { %v594_v51 = vadd.f32 %v1835_v50, %v2269_v3  ;;  %v585_v52 = vpop.f32.mrb[15].mxu0  ;;  %1877 = vmatmul.mubr.bf16.gmra.mrb[8].mxu1 %v698_v44  ;;  %v675_v54 = vmax.f32 %v591_v47, 0.0 }
 0x105   : > { %v586_v53 = vadd.f32 %v2269_v3, %v585_v52  ;;  %v673_v56 = vmax.f32 %v583_v49, 0.0 }
 0x106   : > { %v676_v55 = vmax.f32 %v594_v51, 0.0 }
 0x107   : > { %v674_v57 = vmax.f32 %v586_v53, 0.0  ;;  %v2039_v53 = vld [vmem:[%s2607_s5 + $0x38] sm:$0xff]  }
 0x108   : > { %v700_v58 = vpack.c.bf16 %v676_v55, %v675_v54  ;;  %1914 = vmatprep.subr.bf16.mxu0 %v2039_v53  ;;  %v2040_v54 = vld [vmem:[%s2609_s7] sm:$0xff]   ;;  %v2042_v55 = vld [vmem:[%s2609_s7 + $0x10] sm:$0xff]  }
 0x109   : > { %v699_v59 = vpack.c.bf16 %v674_v57, %v673_v56  ;;  %v1838_v60 = vpop.f32.mrb[16].mxu0  ;;  %1915 = vmatpush3.bf16.msra.mxu0 %v2039_v53  ;;  %1996 = vmatprep.subr.bf16.mxu1 %v2040_v54  ;;  %v2318_v56 = vld [vmem:[%s2609_s7 + $0x18] sm:$0xff]   ;;  %v2324_v57 = vld [vmem:[%s2609_s7 + $0x20] sm:$0xff]  }
 0x10a   : > { %v607_v61 = vadd.f32 %v1838_v60, %v2269_v3  ;;  %v598_v62 = vpop.f32.mrb[17].mxu0  ;;  %1948 = vmatprep.subr.bf16.mxu0 %v2040_v54  ;;  %2004 = vmatpush3.bf16.msra.mxu1 %v2040_v54 }
 0x10b   : > { %v599_v63 = vadd.f32 %v2269_v3, %v598_v62  ;;  %v1839_v0 = vpop.f32.mrb[18].mxu0  ;;  %1880 = vmatprep.mubr.bf16.mxu1 %v699_v59  ;;  %v2339_v59 = vld [vmem:[%s2606_s4] ss:$0 sm:$0xff] }
 0x10c   : > { %v610_v1 = vadd.f32 %v1839_v0, %v2269_v3  ;;  %v601_v2 = vpop.f32.mrb[19].mxu0  ;;  %1881 = vmatmul.mubr.bf16.gmra.mrb[12].mxu1 %v700_v58  ;;  %v679_v5 = vmax.f32 %v607_v61, 0.0  ;;  %v2331_v58 = vld [vmem:[%s2609_s7 + $0x28] sm:$0xff]  }
 0x10d   : > { %v602_v4 = vadd.f32 %v2269_v3, %v601_v2  ;;  %v677_v7 = vmax.f32 %v599_v63, 0.0 }
 0x10e   : > { %v680_v6 = vmax.f32 %v610_v1, 0.0 }
 0x10f   : > { %v678_v8 = vmax.f32 %v602_v4, 0.0 }
 0x110   : > { %v702_v9 = vpack.c.bf16 %v680_v6, %v679_v5 }
 0x111   : > { %v701_v10 = vpack.c.bf16 %v678_v8, %v677_v7  ;;  %v1842_v11 = vpop.f32.mrb[20].mxu0 }
 0x112   : > { %v623_v12 = vadd.f32 %v1842_v11, %v2269_v3  ;;  %v614_v13 = vpop.f32.mrb[21].mxu0 }
 0x113   : > { %v615_v14 = vadd.f32 %v2269_v3, %v614_v13  ;;  %v1843_v15 = vpop.f32.mrb[22].mxu0  ;;  %1884 = vmatprep.mubr.bf16.mxu1 %v701_v10 }
 0x114   : > { %v626_v16 = vadd.f32 %v1843_v15, %v2269_v3  ;;  %v617_v17 = vpop.f32.mrb[23].mxu0  ;;  %1885 = vmatmul.mubr.bf16.gmra.mrb[16].mxu1 %v702_v9  ;;  %v683_v19 = vmax.f32 %v623_v12, 0.0 }
 0x115   : > { %v618_v18 = vadd.f32 %v2269_v3, %v617_v17  ;;  %v681_v21 = vmax.f32 %v615_v14, 0.0 }
 0x116   : > { %v684_v20 = vmax.f32 %v626_v16, 0.0 }
 0x117   : > { %v682_v22 = vmax.f32 %v618_v18, 0.0 }
 0x118   : > { %v704_v23 = vpack.c.bf16 %v684_v20, %v683_v19 }
 0x119   : > { %v703_v24 = vpack.c.bf16 %v682_v22, %v681_v21  ;;  %v1846_v25 = vpop.f32.mrb[24].mxu0 }
 0x11a   : > { %v639_v26 = vadd.f32 %v1846_v25, %v2269_v3  ;;  %v630_v27 = vpop.f32.mrb[25].mxu0 }
 0x11b   : > { %v631_v28 = vadd.f32 %v2269_v3, %v630_v27  ;;  %v1847_v29 = vpop.f32.mrb[26].mxu0  ;;  %1888 = vmatprep.mubr.bf16.mxu1 %v703_v24 }
 0x11c   : > { %v642_v30 = vadd.f32 %v1847_v29, %v2269_v3  ;;  %v633_v31 = vpop.f32.mrb[27].mxu0  ;;  %1889 = vmatmul.mubr.bf16.gmra.mrb[20].mxu1 %v704_v23  ;;  %v687_v33 = vmax.f32 %v639_v26, 0.0 }
 0x11d   : > { %v634_v32 = vadd.f32 %v2269_v3, %v633_v31  ;;  %v685_v35 = vmax.f32 %v631_v28, 0.0 }
 0x11e   : > { %v688_v34 = vmax.f32 %v642_v30, 0.0 }
 0x11f   : > { %v686_v36 = vmax.f32 %v634_v32, 0.0 }
 0x120   : > { %v706_v37 = vpack.c.bf16 %v688_v34, %v687_v33 }
 0x121   : > { %v705_v38 = vpack.c.bf16 %v686_v36, %v685_v35  ;;  %v1850_v39 = vpop.f32.mrb[28].mxu0 }
 0x122   : > { %v655_v40 = vadd.f32 %v1850_v39, %v2269_v3  ;;  %v646_v41 = vpop.f32.mrb[29].mxu0 }
 0x123   : > { %v647_v42 = vadd.f32 %v2269_v3, %v646_v41  ;;  %v1851_v43 = vpop.f32.mrb[30].mxu0  ;;  %1892 = vmatprep.mubr.bf16.mxu1 %v705_v38 }
 0x124   : > { %v658_v44 = vadd.f32 %v1851_v43, %v2269_v3  ;;  %v649_v45 = vpop.f32.mrb[31].mxu0  ;;  %1893 = vmatmul.mubr.bf16.gmra.mrb[24].mxu1 %v706_v37  ;;  %v691_v47 = vmax.f32 %v655_v40, 0.0 }
 0x125   : > { %v650_v46 = vadd.f32 %v2269_v3, %v649_v45  ;;  %v689_v49 = vmax.f32 %v647_v42, 0.0  ;;  %v2041_v3 = vld [vmem:[%s2609_s7 + $0x8] sm:$0xff]  }
 0x126   : > { %v692_v48 = vmax.f32 %v658_v44, 0.0  ;;  %1997 = vmatprep.subr.bf16.mxu1 %v2041_v3 }
 0x127   : > { %v690_v50 = vmax.f32 %v650_v46, 0.0  ;;  %2005 = vmatpush3.bf16.msra.mxu1 %v2041_v3 }
 0x128   : > { %v708_v51 = vpack.c.bf16 %v692_v48, %v691_v47  ;;  %1998 = vmatprep.subr.bf16.mxu1 %v2042_v55 }
 0x129   : > { %v707_v52 = vpack.c.bf16 %v690_v50, %v689_v49 }
 0x12b   : > { %1896 = vmatprep.mubr.bf16.mxu1 %v707_v52  ;;  %2006 = vmatpush3.bf16.msra.mxu1 %v2042_v55 }
 0x12c   : > { %1897 = vmatmul.mubr.bf16.gmra.mrb[28].mxu1 %v708_v51  ;;  %1999 = vmatprep.subr.bf16.mxu1 %v2318_v56 }
 0x12f   : > { %2007 = vmatpush3.bf16.msra.mxu1 %v2318_v56 }
 0x130   : > { %2000 = vmatprep.subr.bf16.mxu1 %v2324_v57 }
 0x133   : > { %2008 = vmatpush3.bf16.msra.mxu1 %v2324_v57 }
 0x134   : > { %2001 = vmatprep.subr.bf16.mxu1 %v2331_v58 }
 0x137   : > { %2009 = vmatpush3.bf16.msra.mxu1 %v2331_v58 }
 0x1c7   : > { %v1870_v60 = vpop.f32.mrb[0].mxu1 }
 0x1c8   : > { %v823_v61 = vadd.f32 %v1870_v60, %v2339_v59  ;;  %v814_v62 = vpop.f32.mrb[1].mxu1 }
 0x1c9   : > { %v815_v63 = vadd.f32 %v2339_v59, %v814_v62  ;;  %v1871_v0 = vpop.f32.mrb[2].mxu1 }
 0x1ca   : > { %v826_v1 = vadd.f32 %v1871_v0, %v2339_v59  ;;  %v817_v2 = vpop.f32.mrb[3].mxu1  ;;  %v943_v5 = vmax.f32 %v823_v61, 0.0 }
 0x1cb   : > { %v818_v4 = vadd.f32 %v2339_v59, %v817_v2  ;;  %v941_v7 = vmax.f32 %v815_v63, 0.0 }
 0x1cc   : > { %v944_v6 = vmax.f32 %v826_v1, 0.0 }
 0x1cd   : > { %v942_v8 = vmax.f32 %v818_v4, 0.0 }
 0x1ce   : > { %v974_v9 = vpack.c.bf16 %v944_v6, %v943_v5 }
 0x1cf   : > { %v973_v10 = vpack.c.bf16 %v942_v8, %v941_v7  ;;  %v1874_v11 = vpop.f32.mrb[4].mxu1 }
 0x1d0   : > { %v839_v12 = vadd.f32 %v1874_v11, %v2339_v59  ;;  %v830_v13 = vpop.f32.mrb[5].mxu1 }
 0x1d1   : > { %v831_v14 = vadd.f32 %v2339_v59, %v830_v13  ;;  %v1875_v15 = vpop.f32.mrb[6].mxu1  ;;  %1916 = vmatprep.mubr.bf16.mxu0 %v973_v10 }
 0x1d2   : > { %v842_v16 = vadd.f32 %v1875_v15, %v2339_v59  ;;  %v833_v17 = vpop.f32.mrb[7].mxu1  ;;  %1917 = vmatmul.mubr.bf16.vlgmr.msra.gmra.mrb[32].mxu0 %v974_v9  ;;  %v947_v19 = vmax.f32 %v839_v12, 0.0 }
 0x1d3   : > { %v834_v18 = vadd.f32 %v2339_v59, %v833_v17  ;;  %1949 = vmatpush3.bf16.msra.mxu0 %v2040_v54  ;;  %v945_v21 = vmax.f32 %v831_v14, 0.0 }
 0x1d4   : > { %v948_v20 = vmax.f32 %v842_v16, 0.0  ;;  %1950 = vmatprep.subr.bf16.mxu0 %v2041_v3 }
 0x1d5   : > { %v946_v22 = vmax.f32 %v834_v18, 0.0 }
 0x1d6   : > { %v976_v23 = vpack.c.bf16 %v948_v20, %v947_v19 }
 0x1d7   : > { %v975_v24 = vpack.c.bf16 %v946_v22, %v945_v21  ;;  %v1878_v25 = vpop.f32.mrb[8].mxu1  ;;  %1951 = vmatpush3.bf16.msra.mxu0 %v2041_v3 }
 0x1d8   : > { %v855_v26 = vadd.f32 %v1878_v25, %v2339_v59  ;;  %v846_v27 = vpop.f32.mrb[9].mxu1  ;;  %1952 = vmatprep.subr.bf16.mxu0 %v2042_v55 }
 0x1d9   : > { %v847_v28 = vadd.f32 %v2339_v59, %v846_v27  ;;  %v1879_v29 = vpop.f32.mrb[10].mxu1  ;;  %1920 = vmatprep.mubr.bf16.mxu0 %v975_v24 }
 0x1da   : > { %v858_v30 = vadd.f32 %v1879_v29, %v2339_v59  ;;  %v849_v31 = vpop.f32.mrb[11].mxu1  ;;  %1921 = vmatmul.mubr.bf16.gmra.mrb[36].mxu0 %v976_v23  ;;  %v951_v33 = vmax.f32 %v855_v26, 0.0 }
 0x1db   : > { %v850_v32 = vadd.f32 %v2339_v59, %v849_v31  ;;  %1953 = vmatpush3.bf16.msra.mxu0 %v2042_v55  ;;  %v949_v35 = vmax.f32 %v847_v28, 0.0 }
 0x1dc   : > { %v952_v34 = vmax.f32 %v858_v30, 0.0  ;;  %1954 = vmatprep.subr.bf16.mxu0 %v2318_v56 }
 0x1dd   : > { %v950_v36 = vmax.f32 %v850_v32, 0.0 }
 0x1de   : > { %v978_v37 = vpack.c.bf16 %v952_v34, %v951_v33 }
 0x1df   : > { %v977_v38 = vpack.c.bf16 %v950_v36, %v949_v35  ;;  %v1882_v39 = vpop.f32.mrb[12].mxu1  ;;  %1955 = vmatpush3.bf16.msra.mxu0 %v2318_v56 }
 0x1e0   : > { %v871_v40 = vadd.f32 %v1882_v39, %v2339_v59  ;;  %v862_v41 = vpop.f32.mrb[13].mxu1  ;;  %1956 = vmatprep.subr.bf16.mxu0 %v2324_v57 }
 0x1e1   : > { %v863_v42 = vadd.f32 %v2339_v59, %v862_v41  ;;  %v1883_v43 = vpop.f32.mrb[14].mxu1  ;;  %1924 = vmatprep.mubr.bf16.mxu0 %v977_v38 }
 0x1e2   : > { %v874_v44 = vadd.f32 %v1883_v43, %v2339_v59  ;;  %v865_v45 = vpop.f32.mrb[15].mxu1  ;;  %1925 = vmatmul.mubr.bf16.gmra.mrb[40].mxu0 %v978_v37  ;;  %v955_v47 = vmax.f32 %v871_v40, 0.0 }
 0x1e3   : > { %v866_v46 = vadd.f32 %v2339_v59, %v865_v45  ;;  %1957 = vmatpush3.bf16.msra.mxu0 %v2324_v57  ;;  %v953_v49 = vmax.f32 %v863_v42, 0.0 }
 0x1e4   : > { %v956_v48 = vmax.f32 %v874_v44, 0.0  ;;  %1958 = vmatprep.subr.bf16.mxu0 %v2331_v58 }
 0x1e5   : > { %v954_v50 = vmax.f32 %v866_v46, 0.0  ;;  %v2046_v46 = vld [vmem:[%s2609_s7 + $0x30] sm:$0xff]  }
 0x1e6   : > { %v980_v51 = vpack.c.bf16 %v956_v48, %v955_v47  ;;  %2002 = vmatprep.subr.bf16.mxu1 %v2046_v46  ;;  %v2388_v47 = vld [vmem:[%s2608_s6] ss:$0 sm:$0xff] }
 0x1e7   : > { %v979_v52 = vpack.c.bf16 %v954_v50, %v953_v49  ;;  %v1886_v53 = vpop.f32.mrb[16].mxu1  ;;  %1959 = vmatpush3.bf16.msra.mxu0 %v2331_v58  ;;  %2010 = vmatpush3.bf16.msra.mxu1 %v2046_v46 }
 0x1e8   : > { %v887_v54 = vadd.f32 %v1886_v53, %v2339_v59  ;;  %v878_v3 = vpop.f32.mrb[17].mxu1  ;;  %1960 = vmatprep.subr.bf16.mxu0 %v2046_v46 }
 0x1e9   : > { %v879_v55 = vadd.f32 %v2339_v59, %v878_v3  ;;  %v1887_v56 = vpop.f32.mrb[18].mxu1  ;;  %1928 = vmatprep.mubr.bf16.mxu0 %v979_v52 }
 0x1ea   : > { %v890_v57 = vadd.f32 %v1887_v56, %v2339_v59  ;;  %v881_v60 = vpop.f32.mrb[19].mxu1  ;;  %1929 = vmatmul.mubr.bf16.gmra.mrb[44].mxu0 %v980_v51  ;;  %v959_v62 = vmax.f32 %v887_v54, 0.0 }
 0x1eb   : > { %v882_v61 = vadd.f32 %v2339_v59, %v881_v60  ;;  %v957_v0 = vmax.f32 %v879_v55, 0.0  ;;  %1961 = vmatpush3.bf16.msra.mxu0 %v2046_v46 }
 0x1ec   : > { %v960_v63 = vmax.f32 %v890_v57, 0.0 }
 0x1ed   : > { %v958_v1 = vmax.f32 %v882_v61, 0.0 }
 0x1ee   : > { %v982_v2 = vpack.c.bf16 %v960_v63, %v959_v62 }
 0x1ef   : > { %v981_v4 = vpack.c.bf16 %v958_v1, %v957_v0  ;;  %v1890_v58 = vpop.f32.mrb[20].mxu1 }
 0x1f0   : > { %v903_v5 = vadd.f32 %v1890_v58, %v2339_v59  ;;  %v894_v6 = vpop.f32.mrb[21].mxu1 }
 0x1f1   : > { %v895_v7 = vadd.f32 %v2339_v59, %v894_v6  ;;  %v1891_v8 = vpop.f32.mrb[22].mxu1  ;;  %1932 = vmatprep.mubr.bf16.mxu0 %v981_v4 }
 0x1f2   : > { %v906_v9 = vadd.f32 %v1891_v8, %v2339_v59  ;;  %v897_v10 = vpop.f32.mrb[23].mxu1  ;;  %1933 = vmatmul.mubr.bf16.gmra.mrb[48].mxu0 %v982_v2  ;;  %v963_v12 = vmax.f32 %v903_v5, 0.0 }
 0x1f3   : > { %v898_v11 = vadd.f32 %v2339_v59, %v897_v10  ;;  %v961_v14 = vmax.f32 %v895_v7, 0.0 }
 0x1f4   : > { %v964_v13 = vmax.f32 %v906_v9, 0.0 }
 0x1f5   : > { %v962_v15 = vmax.f32 %v898_v11, 0.0 }
 0x1f6   : > { %v984_v16 = vpack.c.bf16 %v964_v13, %v963_v12 }
 0x1f7   : > { %v983_v17 = vpack.c.bf16 %v962_v15, %v961_v14  ;;  %v1894_v18 = vpop.f32.mrb[24].mxu1 }
 0x1f8   : > { %v919_v19 = vadd.f32 %v1894_v18, %v2339_v59  ;;  %v910_v20 = vpop.f32.mrb[25].mxu1 }
 0x1f9   : > { %v911_v21 = vadd.f32 %v2339_v59, %v910_v20  ;;  %v1895_v22 = vpop.f32.mrb[26].mxu1  ;;  %1936 = vmatprep.mubr.bf16.mxu0 %v983_v17 }
 0x1fa   : > { %v922_v23 = vadd.f32 %v1895_v22, %v2339_v59  ;;  %v913_v24 = vpop.f32.mrb[27].mxu1  ;;  %1937 = vmatmul.mubr.bf16.gmra.mrb[52].mxu0 %v984_v16  ;;  %v967_v26 = vmax.f32 %v919_v19, 0.0 }
 0x1fb   : > { %v914_v25 = vadd.f32 %v2339_v59, %v913_v24  ;;  %v965_v28 = vmax.f32 %v911_v21, 0.0 }
 0x1fc   : > { %v968_v27 = vmax.f32 %v922_v23, 0.0 }
 0x1fd   : > { %v966_v29 = vmax.f32 %v914_v25, 0.0 }
 0x1fe   : > { %v986_v30 = vpack.c.bf16 %v968_v27, %v967_v26 }
 0x1ff   : > { %v985_v31 = vpack.c.bf16 %v966_v29, %v965_v28  ;;  %v1898_v32 = vpop.f32.mrb[28].mxu1 }
 0x200   : > { %v935_v33 = vadd.f32 %v1898_v32, %v2339_v59  ;;  %v926_v34 = vpop.f32.mrb[29].mxu1 }
 0x201   : > { %v927_v35 = vadd.f32 %v2339_v59, %v926_v34  ;;  %v1899_v36 = vpop.f32.mrb[30].mxu1  ;;  %1940 = vmatprep.mubr.bf16.mxu0 %v985_v31 }
 0x202   : > { %v938_v37 = vadd.f32 %v1899_v36, %v2339_v59  ;;  %v929_v38 = vpop.f32.mrb[31].mxu1  ;;  %1941 = vmatmul.mubr.bf16.gmra.mrb[56].mxu0 %v986_v30  ;;  %v971_v40 = vmax.f32 %v935_v33, 0.0 }
 0x203   : > { %v930_v39 = vadd.f32 %v2339_v59, %v929_v38  ;;  %v969_v42 = vmax.f32 %v927_v35, 0.0  ;;  %v2047_v59 = vld [vmem:[%s2609_s7 + $0x38] sm:$0xff]  }
 0x204   : > { %v972_v41 = vmax.f32 %v938_v37, 0.0  ;;  %1962 = vmatprep.subr.bf16.mxu0 %v2047_v59  ;;  %2003 = vmatprep.subr.bf16.mxu1 %v2047_v59 }
 0x205   : > { %v970_v43 = vmax.f32 %v930_v39, 0.0  ;;  %1963 = vmatpush3.bf16.msra.mxu0 %v2047_v59  ;;  %2011 = vmatpush3.bf16.msra.mxu1 %v2047_v59 }
 0x206   : > { %v988_v44 = vpack.c.bf16 %v972_v41, %v971_v40 }
 0x207   : > { %v987_v45 = vpack.c.bf16 %v970_v43, %v969_v42 }
 0x209   : > { %1944 = vmatprep.mubr.bf16.mxu0 %v987_v45 }
 0x20a   : > { %1945 = vmatmul.mubr.bf16.gmra.mrb[60].mxu0 %v988_v44 }
 0x2a5   : > { %v1918_v48 = vpop.f32.mrb[32].mxu0 }
 0x2a6   : > { %v1103_v49 = vadd.f32 %v1918_v48, %v2388_v47  ;;  %v1094_v50 = vpop.f32.mrb[33].mxu0 }
 0x2a7   : > { %v1095_v51 = vadd.f32 %v2388_v47, %v1094_v50  ;;  %v1919_v52 = vpop.f32.mrb[34].mxu0 }
 0x2a8   : > { %v1106_v53 = vadd.f32 %v1919_v52, %v2388_v47  ;;  %v1097_v54 = vpop.f32.mrb[35].mxu0  ;;  %v1223_v55 = vmax.f32 %v1103_v49, 0.0 }
 0x2a9   : > { %v1098_v3 = vadd.f32 %v2388_v47, %v1097_v54  ;;  %v1221_v57 = vmax.f32 %v1095_v51, 0.0 }
 0x2aa   : > { %v1224_v56 = vmax.f32 %v1106_v53, 0.0 }
 0x2ab   : > { %v1222_v60 = vmax.f32 %v1098_v3, 0.0 }
 0x2ac   : > { %v1254_v61 = vpack.c.bf16 %v1224_v56, %v1223_v55 }
 0x2ad   : > { %v1253_v62 = vpack.c.bf16 %v1222_v60, %v1221_v57  ;;  %v1922_v63 = vpop.f32.mrb[36].mxu0 }
 0x2ae   : > { %v1119_v0 = vadd.f32 %v1922_v63, %v2388_v47  ;;  %v1110_v1 = vpop.f32.mrb[37].mxu0 }
 0x2af   : > { %v1111_v2 = vadd.f32 %v2388_v47, %v1110_v1  ;;  %v1923_v4 = vpop.f32.mrb[38].mxu0  ;;  %1964 = vmatprep.mubr.bf16.mxu0 %v1253_v62 }
 0x2b0   : > { %v1122_v58 = vadd.f32 %v1923_v4, %v2388_v47  ;;  %v1113_v5 = vpop.f32.mrb[39].mxu0  ;;  %1965 = vmatmul.mubr.bf16.vlgmr.msra.gmra.mrb[64].mxu0 %v1254_v61  ;;  %v1227_v7 = vmax.f32 %v1119_v0, 0.0 }
 0x2b1   : > { %v1114_v6 = vadd.f32 %v2388_v47, %v1113_v5  ;;  %v1225_v9 = vmax.f32 %v1111_v2, 0.0 }
 0x2b2   : > { %v1228_v8 = vmax.f32 %v1122_v58, 0.0 }
 0x2b3   : > { %v1226_v10 = vmax.f32 %v1114_v6, 0.0 }
 0x2b4   : > { %v1256_v11 = vpack.c.bf16 %v1228_v8, %v1227_v7 }
 0x2b5   : > { %v1255_v12 = vpack.c.bf16 %v1226_v10, %v1225_v9  ;;  %v1926_v13 = vpop.f32.mrb[40].mxu0 }
 0x2b6   : > { %v1135_v14 = vadd.f32 %v1926_v13, %v2388_v47  ;;  %v1126_v15 = vpop.f32.mrb[41].mxu0 }
 0x2b7   : > { %v1127_v16 = vadd.f32 %v2388_v47, %v1126_v15  ;;  %v1927_v17 = vpop.f32.mrb[42].mxu0  ;;  %1968 = vmatprep.mubr.bf16.mxu1 %v1255_v12 }
 0x2b8   : > { %v1138_v18 = vadd.f32 %v1927_v17, %v2388_v47  ;;  %v1129_v19 = vpop.f32.mrb[43].mxu0  ;;  %1969 = vmatmul.mubr.bf16.vlgmr.msra.gmra.mrb[32].mxu1 %v1256_v11  ;;  %v1231_v21 = vmax.f32 %v1135_v14, 0.0 }
 0x2b9   : > { %v1130_v20 = vadd.f32 %v2388_v47, %v1129_v19  ;;  %v1229_v23 = vmax.f32 %v1127_v16, 0.0 }
 0x2ba   : > { %v1232_v22 = vmax.f32 %v1138_v18, 0.0 }
 0x2bb   : > { %v1230_v24 = vmax.f32 %v1130_v20, 0.0 }
 0x2bc   : > { %v1258_v25 = vpack.c.bf16 %v1232_v22, %v1231_v21 }
 0x2bd   : > { %v1257_v26 = vpack.c.bf16 %v1230_v24, %v1229_v23  ;;  %v1930_v27 = vpop.f32.mrb[44].mxu0 }
 0x2be   : > { %v1151_v28 = vadd.f32 %v1930_v27, %v2388_v47  ;;  %v1142_v29 = vpop.f32.mrb[45].mxu0 }
 0x2bf   : > { %v1143_v30 = vadd.f32 %v2388_v47, %v1142_v29  ;;  %v1931_v31 = vpop.f32.mrb[46].mxu0  ;;  %1972 = vmatprep.mubr.bf16.mxu1 %v1257_v26 }
 0x2c0   : > { %v1154_v32 = vadd.f32 %v1931_v31, %v2388_v47  ;;  %v1145_v33 = vpop.f32.mrb[47].mxu0  ;;  %1973 = vmatmul.mubr.bf16.gmra.mrb[36].mxu1 %v1258_v25  ;;  %v1235_v35 = vmax.f32 %v1151_v28, 0.0 }
 0x2c1   : > { %v1146_v34 = vadd.f32 %v2388_v47, %v1145_v33  ;;  %v1233_v37 = vmax.f32 %v1143_v30, 0.0 }
 0x2c2   : > { %v1236_v36 = vmax.f32 %v1154_v32, 0.0 }
 0x2c3   : > { %v1234_v38 = vmax.f32 %v1146_v34, 0.0  ;;  %v2425_v34 = vld [vmem:[%s2611_s9] ss:$0 sm:$0xff] }
 0x2c4   : > { %v1260_v39 = vpack.c.bf16 %v1236_v36, %v1235_v35  ;;  %v2048_v35 = vld [vmem:[%s2171_s27 + $0x10] sm:$0xff] }
 0x2c5   : > { %v1259_v40 = vpack.c.bf16 %v1234_v38, %v1233_v37  ;;  %v1934_v41 = vpop.f32.mrb[48].mxu0  ;;  %v1510_v36 = vmul.f32 %v2048_v35, %v2425_v34  ;;  %v2049_v37 = vld [vmem:[%s2171_s27] sm:$0xff] }
 0x2c6   : > { %v1167_v42 = vadd.f32 %v1934_v41, %v2388_v47  ;;  %v1158_v43 = vpop.f32.mrb[49].mxu0  ;;  %v1508_v38 = vmul.f32 %v2049_v37, %v2425_v34 }
 0x2c7   : > { %v1159_v44 = vadd.f32 %v2388_v47, %v1158_v43  ;;  %v1935_v45 = vpop.f32.mrb[50].mxu0  ;;  %1976 = vmatprep.mubr.bf16.mxu1 %v1259_v40 }
 0x2c8   : > { %v1170_v46 = vadd.f32 %v1935_v45, %v2388_v47  ;;  %v1161_v59 = vpop.f32.mrb[51].mxu0  ;;  %1977 = vmatmul.mubr.bf16.gmra.mrb[40].mxu1 %v1260_v39  ;;  %v1239_v49 = vmax.f32 %v1167_v42, 0.0  ;;  %v2050_v42 = vld [vmem:[%s2171_s27 + $0x18] sm:$0xff] }
 0x2c9   : > { %v1162_v48 = vadd.f32 %v2388_v47, %v1161_v59  ;;  %v1237_v51 = vmax.f32 %v1159_v44, 0.0  ;;  %v1511_v43 = vmul.f32 %v2050_v42, %v2425_v34  ;;  %v2051_v44 = vld [vmem:[%s2171_s27 + $0x8] sm:$0xff] }
 0x2ca   : > { %v1240_v50 = vmax.f32 %v1170_v46, 0.0  ;;  %v1509_v45 = vmul.f32 %v2051_v44, %v2425_v34  ;;  %v2063_v44 = vld [vmem:[%s2171_s27 + $0x68] sm:$0xff] }
 0x2cb   : > { %v1238_v52 = vmax.f32 %v1162_v48, 0.0 }
 0x2cc   : > { %v1262_v53 = vpack.c.bf16 %v1240_v50, %v1239_v49 }
 0x2cd   : > { %v1261_v54 = vpack.c.bf16 %v1238_v52, %v1237_v51  ;;  %v1938_v3 = vpop.f32.mrb[52].mxu0 }
 0x2ce   : > { %v1183_v55 = vadd.f32 %v1938_v3, %v2388_v47  ;;  %v1174_v56 = vpop.f32.mrb[53].mxu0  ;;  %v2052_v3 = vld [vmem:[%s2171_s27 + $0x30] sm:$0xff] }
 0x2cf   : > { %v1175_v57 = vadd.f32 %v2388_v47, %v1174_v56  ;;  %v1939_v60 = vpop.f32.mrb[54].mxu0  ;;  %1980 = vmatprep.mubr.bf16.mxu1 %v1261_v54 }
 0x2d0   : > { %v1186_v61 = vadd.f32 %v1939_v60, %v2388_v47  ;;  %v1177_v62 = vpop.f32.mrb[55].mxu0  ;;  %1981 = vmatmul.mubr.bf16.gmra.mrb[44].mxu1 %v1262_v53  ;;  %v1243_v0 = vmax.f32 %v1183_v55, 0.0  ;;  %v1514_v55 = vmul.f32 %v2052_v3, %v2425_v34 }
 0x2d1   : > { %v1178_v63 = vadd.f32 %v2388_v47, %v1177_v62  ;;  %v1241_v2 = vmax.f32 %v1175_v57, 0.0  ;;  %v2053_v57 = vld [vmem:[%s2171_s27 + $0x20] sm:$0xff] }
 0x2d2   : > { %v1244_v1 = vmax.f32 %v1186_v61, 0.0  ;;  %v1512_v60 = vmul.f32 %v2053_v57, %v2425_v34 }
 0x2d3   : > { %v1242_v4 = vmax.f32 %v1178_v63, 0.0  ;;  %v2054_v63 = vld [vmem:[%s2171_s27 + $0x38] sm:$0xff] }
 0x2d4   : > { %v1264_v58 = vpack.c.bf16 %v1244_v1, %v1243_v0  ;;  %v1515_v0 = vmul.f32 %v2054_v63, %v2425_v34 }
 0x2d5   : > { %v1263_v5 = vpack.c.bf16 %v1242_v4, %v1241_v2  ;;  %v1942_v6 = vpop.f32.mrb[56].mxu0  ;;  %v2055_v4 = vld [vmem:[%s2171_s27 + $0x28] sm:$0xff] }
 0x2d6   : > { %v1199_v7 = vadd.f32 %v1942_v6, %v2388_v47  ;;  %v1190_v8 = vpop.f32.mrb[57].mxu0 }
 0x2d7   : > { %v1191_v9 = vadd.f32 %v2388_v47, %v1190_v8  ;;  %v1943_v10 = vpop.f32.mrb[58].mxu0  ;;  %1984 = vmatprep.mubr.bf16.mxu1 %v1263_v5 }
 0x2d8   : > { %v1202_v11 = vadd.f32 %v1943_v10, %v2388_v47  ;;  %v1193_v12 = vpop.f32.mrb[59].mxu0  ;;  %1985 = vmatmul.mubr.bf16.gmra.mrb[48].mxu1 %v1264_v58  ;;  %v1247_v14 = vmax.f32 %v1199_v7, 0.0  ;;  %v1513_v58 = vmul.f32 %v2055_v4, %v2425_v34 }
 0x2d9   : > { %v1194_v13 = vadd.f32 %v2388_v47, %v1193_v12  ;;  %v1245_v16 = vmax.f32 %v1191_v9, 0.0  ;;  %v2056_v12 = vld [vmem:[%s2171_s27 + $0x50] sm:$0xff] }
 0x2da   : > { %v1248_v15 = vmax.f32 %v1202_v11, 0.0 }
 0x2db   : > { %v1246_v17 = vmax.f32 %v1194_v13, 0.0  ;;  %v1518_v13 = vmul.f32 %v2056_v12, %v2425_v34 }
 0x2dc   : > { %v1266_v18 = vpack.c.bf16 %v1248_v15, %v1247_v14  ;;  %v2057_v15 = vld [vmem:[%s2171_s27 + $0x40] sm:$0xff] }
 0x2dd   : > { %v1265_v19 = vpack.c.bf16 %v1246_v17, %v1245_v16  ;;  %v1946_v20 = vpop.f32.mrb[60].mxu0  ;;  %v1516_v16 = vmul.f32 %v2057_v15, %v2425_v34 }
 0x2de   : > { %v1215_v21 = vadd.f32 %v1946_v20, %v2388_v47  ;;  %v1206_v22 = vpop.f32.mrb[61].mxu0 }
 0x2df   : > { %v1207_v23 = vadd.f32 %v2388_v47, %v1206_v22  ;;  %v1947_v24 = vpop.f32.mrb[62].mxu0  ;;  %1988 = vmatprep.mubr.bf16.mxu1 %v1265_v19  ;;  %v2058_v19 = vld [vmem:[%s2171_s27 + $0x58] sm:$0xff] }
 0x2e0   : > { %v1218_v25 = vadd.f32 %v1947_v24, %v2388_v47  ;;  %v1209_v26 = vpop.f32.mrb[63].mxu0  ;;  %1989 = vmatmul.mubr.bf16.gmra.mrb[52].mxu1 %v1266_v18  ;;  %v1251_v28 = vmax.f32 %v1215_v21, 0.0  ;;  %v1519_v20 = vmul.f32 %v2058_v19, %v2425_v34 }
 0x2e1   : > { %v1210_v27 = vadd.f32 %v2388_v47, %v1209_v26  ;;  %v1249_v30 = vmax.f32 %v1207_v23, 0.0  ;;  %v2430_v47 = vld [vmem:[%s2610_s8] ss:$0 sm:$0xff]  ;;  %v2059_v23 = vld [vmem:[%s2171_s27 + $0x48] sm:$0xff] }
 0x2e2   : > { %v1252_v29 = vmax.f32 %v1218_v25, 0.0  ;;  %v1517_v24 = vmul.f32 %v2059_v23, %v2425_v34 }
 0x2e3   : > { %v1250_v31 = vmax.f32 %v1210_v27, 0.0 }
 0x2e4   : > { %v1268_v32 = vpack.c.bf16 %v1252_v29, %v1251_v28 }
 0x2e5   : > { %v1267_v33 = vpack.c.bf16 %v1250_v31, %v1249_v30 }
 0x2e7   : > { %1992 = vmatprep.mubr.bf16.mxu1 %v1267_v33 }
 0x2e8   : > { %1993 = vmatmul.mubr.bf16.gmra.mrb[56].mxu1 %v1268_v32  ;;  %v2060_v32 = vld [vmem:[%s2171_s27 + $0x70] sm:$0xff] }
 0x2e9   : > { %v1522_v33 = vmul.f32 %v2060_v32, %v2425_v34 }
 0x383   : > { %v1966_v39 = vpop.f32.mrb[64].mxu0 }
 0x384   : > { %v1383_v40 = vadd.f32 %v1966_v39, %v2430_v47  ;;  %v1374_v41 = vpop.f32.mrb[65].mxu0 }
 0x385   : > { %v1375_v46 = vadd.f32 %v2430_v47, %v1374_v41  ;;  %v1967_v59 = vpop.f32.mrb[66].mxu0 }
 0x386   : > { %v1542_v48 = vadd.f32 %v1510_v36, %v1383_v40  ;;  %v1386_v49 = vadd.f32 %v1967_v59, %v2430_v47  ;;  %v1377_v50 = vpop.f32.mrb[67].mxu0  ;;  %v2061_v36 = vld [vmem:[%s2171_s27 + $0x60] sm:$0xff]  ;;  %v2062_v40 = vld [vmem:[%s2171_s27 + $0x78] sm:$0xff] }
 0x387   : > { %v1540_v51 = vadd.f32 %v1508_v38, %v1375_v46  ;;  %v1378_v52 = vadd.f32 %v2430_v47, %v1377_v50  ;;  %v1520_v37 = vmul.f32 %v2061_v36, %v2425_v34  ;;  %v1523_v41 = vmul.f32 %v2062_v40, %v2425_v34 }
 0x388   : > { %1574 = vst.msk [vmem:[%s2444_s23 + $0x10] sm:$0xff] %vm451_vm0, %v1542_v48  ;;  %v1543_v53 = vadd.f32 %v1511_v43, %v1386_v49 }
 0x389   : > { %1572 = vst.msk [vmem:[%s2444_s23] sm:$0xff] %vm451_vm0, %v1540_v51  ;;  %v1541_v54 = vadd.f32 %v1509_v45, %v1378_v52  ;;  %v1521_v45 = vmul.f32 %v2063_v44, %v2425_v34 }
 0x38a   : > { %1575 = vst.msk [vmem:[%s2444_s23 + $0x18] sm:$0xff] %vm451_vm0, %v1543_v53  ;;  %v2064_v53 = vld [vmem:[%s2171_s27 + $0x90] sm:$0xff] }
 0x38b   : > { %1573 = vst.msk [vmem:[%s2444_s23 + $0x8] sm:$0xff] %vm451_vm0, %v1541_v54  ;;  %v1970_v56 = vpop.f32.mrb[32].mxu1  ;;  %v1526_v54 = vmul.f32 %v2064_v53, %v2425_v34 }
 0x38c   : > { %v1399_v61 = vadd.f32 %v1970_v56, %v2430_v47  ;;  %v1390_v62 = vpop.f32.mrb[33].mxu1 }
 0x38d   : > { %v1391_v1 = vadd.f32 %v2430_v47, %v1390_v62  ;;  %v1971_v2 = vpop.f32.mrb[34].mxu1 }
 0x38e   : > { %v1546_v5 = vadd.f32 %v1514_v55, %v1399_v61  ;;  %v1402_v6 = vadd.f32 %v1971_v2, %v2430_v47  ;;  %v1393_v7 = vpop.f32.mrb[35].mxu1  ;;  %v2065_v55 = vld [vmem:[%s2171_s27 + $0x80] sm:$0xff]  ;;  %v2066_v61 = vld [vmem:[%s2171_s27 + $0x98] sm:$0xff] }
 0x38f   : > { %v1544_v8 = vadd.f32 %v1512_v60, %v1391_v1  ;;  %v1394_v9 = vadd.f32 %v2430_v47, %v1393_v7  ;;  %v1524_v56 = vmul.f32 %v2065_v55, %v2425_v34  ;;  %v1527_v62 = vmul.f32 %v2066_v61, %v2425_v34  ;;  %v2067_v1 = vld [vmem:[%s2171_s27 + $0x88] sm:$0xff] }
 0x390   : > { %1578 = vst.msk [vmem:[%s2444_s23 + $0x30] sm:$0xff] %vm451_vm0, %v1546_v5  ;;  %v1547_v10 = vadd.f32 %v1515_v0, %v1402_v6  ;;  %v1525_v2 = vmul.f32 %v2067_v1, %v2425_v34 }
 0x391   : > { %1576 = vst.msk [vmem:[%s2444_s23 + $0x20] sm:$0xff] %vm451_vm0, %v1544_v8  ;;  %v1545_v11 = vadd.f32 %v1513_v58, %v1394_v9 }
 0x392   : > { %1579 = vst.msk [vmem:[%s2444_s23 + $0x38] sm:$0xff] %vm451_vm0, %v1547_v10  ;;  %v2068_v10 = vld [vmem:[%s2171_s27 + $0xb0] sm:$0xff] }
 0x393   : > { %1577 = vst.msk [vmem:[%s2444_s23 + $0x28] sm:$0xff] %vm451_vm0, %v1545_v11  ;;  %v1974_v14 = vpop.f32.mrb[36].mxu1  ;;  %v1530_v11 = vmul.f32 %v2068_v10, %v2425_v34 }
 0x394   : > { %v1415_v17 = vadd.f32 %v1974_v14, %v2430_v47  ;;  %v1406_v18 = vpop.f32.mrb[37].mxu1 }
 0x395   : > { %v1407_v21 = vadd.f32 %v2430_v47, %v1406_v18  ;;  %v1975_v22 = vpop.f32.mrb[38].mxu1 }
 0x396   : > { %v1550_v25 = vadd.f32 %v1518_v13, %v1415_v17  ;;  %v1418_v26 = vadd.f32 %v1975_v22, %v2430_v47  ;;  %v1409_v27 = vpop.f32.mrb[39].mxu1  ;;  %v2069_v13 = vld [vmem:[%s2171_s27 + $0xa0] sm:$0xff]  ;;  %v2070_v17 = vld [vmem:[%s2171_s27 + $0xb8] sm:$0xff] }
 0x397   : > { %v1548_v28 = vadd.f32 %v1516_v16, %v1407_v21  ;;  %v1410_v29 = vadd.f32 %v2430_v47, %v1409_v27  ;;  %v1528_v14 = vmul.f32 %v2069_v13, %v2425_v34  ;;  %v1531_v18 = vmul.f32 %v2070_v17, %v2425_v34  ;;  %v2071_v21 = vld [vmem:[%s2171_s27 + $0xa8] sm:$0xff] }
 0x398   : > { %1582 = vst.msk [vmem:[%s2444_s23 + $0x50] sm:$0xff] %vm451_vm0, %v1550_v25  ;;  %v1551_v30 = vadd.f32 %v1519_v20, %v1418_v26  ;;  %v1529_v22 = vmul.f32 %v2071_v21, %v2425_v34 }
 0x399   : > { %1580 = vst.msk [vmem:[%s2444_s23 + $0x40] sm:$0xff] %vm451_vm0, %v1548_v28  ;;  %v1549_v31 = vadd.f32 %v1517_v24, %v1410_v29 }
 0x39a   : > { %1583 = vst.msk [vmem:[%s2444_s23 + $0x58] sm:$0xff] %vm451_vm0, %v1551_v30  ;;  %v2072_v30 = vld [vmem:[%s2171_s27 + $0xd0] sm:$0xff] }
 0x39b   : > { %1581 = vst.msk [vmem:[%s2444_s23 + $0x48] sm:$0xff] %vm451_vm0, %v1549_v31  ;;  %v1978_v35 = vpop.f32.mrb[40].mxu1  ;;  %v1534_v31 = vmul.f32 %v2072_v30, %v2425_v34 }
 0x39c   : > { %v1431_v38 = vadd.f32 %v1978_v35, %v2430_v47  ;;  %v1422_v39 = vpop.f32.mrb[41].mxu1 }
 0x39d   : > { %v1423_v42 = vadd.f32 %v2430_v47, %v1422_v39  ;;  %v1979_v43 = vpop.f32.mrb[42].mxu1 }
 0x39e   : > { %v1554_v46 = vadd.f32 %v1522_v33, %v1431_v38  ;;  %v1434_v59 = vadd.f32 %v1979_v43, %v2430_v47  ;;  %v1425_v48 = vpop.f32.mrb[43].mxu1  ;;  %v2073_v33 = vld [vmem:[%s2171_s27 + $0xc0] sm:$0xff]  ;;  %v2074_v38 = vld [vmem:[%s2171_s27 + $0xd8] sm:$0xff] }
 0x39f   : > { %v1552_v49 = vadd.f32 %v1520_v37, %v1423_v42  ;;  %v1426_v50 = vadd.f32 %v2430_v47, %v1425_v48  ;;  %v1532_v35 = vmul.f32 %v2073_v33, %v2425_v34  ;;  %v1535_v39 = vmul.f32 %v2074_v38, %v2425_v34  ;;  %v2075_v42 = vld [vmem:[%s2171_s27 + $0xc8] sm:$0xff] }
 0x3a0   : > { %1586 = vst.msk [vmem:[%s2444_s23 + $0x70] sm:$0xff] %vm451_vm0, %v1554_v46  ;;  %v1555_v51 = vadd.f32 %v1523_v41, %v1434_v59  ;;  %v1533_v43 = vmul.f32 %v2075_v42, %v2425_v34 }
 0x3a1   : > { %1584 = vst.msk [vmem:[%s2444_s23 + $0x60] sm:$0xff] %vm451_vm0, %v1552_v49  ;;  %v1553_v52 = vadd.f32 %v1521_v45, %v1426_v50 }
 0x3a2   : > { %1587 = vst.msk [vmem:[%s2444_s23 + $0x78] sm:$0xff] %vm451_vm0, %v1555_v51  ;;  %v2076_v51 = vld [vmem:[%s2171_s27 + $0xf0] sm:$0xff] }
 0x3a3   : > { %1585 = vst.msk [vmem:[%s2444_s23 + $0x68] sm:$0xff] %vm451_vm0, %v1553_v52  ;;  %v1982_v3 = vpop.f32.mrb[44].mxu1  ;;  %v1538_v52 = vmul.f32 %v2076_v51, %v2425_v34 }
 0x3a4   : > { %v1447_v57 = vadd.f32 %v1982_v3, %v2430_v47  ;;  %v1438_v60 = vpop.f32.mrb[45].mxu1 }
 0x3a5   : > { %v1439_v63 = vadd.f32 %v2430_v47, %v1438_v60  ;;  %v1983_v0 = vpop.f32.mrb[46].mxu1 }
 0x3a6   : > { %v1558_v4 = vadd.f32 %v1526_v54, %v1447_v57  ;;  %v1450_v58 = vadd.f32 %v1983_v0, %v2430_v47  ;;  %v1441_v5 = vpop.f32.mrb[47].mxu1  ;;  %v2077_v54 = vld [vmem:[%s2171_s27 + $0xe0] sm:$0xff]  ;;  %v2078_v57 = vld [vmem:[%s2171_s27 + $0xf8] sm:$0xff] }
 0x3a7   : > { %v1556_v6 = vadd.f32 %v1524_v56, %v1439_v63  ;;  %v1442_v7 = vadd.f32 %v2430_v47, %v1441_v5  ;;  %v1536_v3 = vmul.f32 %v2077_v54, %v2425_v34  ;;  %v1539_v60 = vmul.f32 %v2078_v57, %v2425_v34  ;;  %v2079_v63 = vld [vmem:[%s2171_s27 + $0xe8] sm:$0xff] }
 0x3a8   : > { %1590 = vst.msk [vmem:[%s2444_s23 + $0x90] sm:$0xff] %vm451_vm0, %v1558_v4  ;;  %v1559_v8 = vadd.f32 %v1527_v62, %v1450_v58  ;;  %v1537_v0 = vmul.f32 %v2079_v63, %v2425_v34 }
 0x3a9   : > { %1588 = vst.msk [vmem:[%s2444_s23 + $0x80] sm:$0xff] %vm451_vm0, %v1556_v6  ;;  %v1557_v9 = vadd.f32 %v1525_v2, %v1442_v7 }
 0x3aa   : > { %1591 = vst.msk [vmem:[%s2444_s23 + $0x98] sm:$0xff] %vm451_vm0, %v1559_v8 }
 0x3ab   : > { %1589 = vst.msk [vmem:[%s2444_s23 + $0x88] sm:$0xff] %vm451_vm0, %v1557_v9  ;;  %v1986_v12 = vpop.f32.mrb[48].mxu1 }
 0x3ac   : > { %v1463_v15 = vadd.f32 %v1986_v12, %v2430_v47  ;;  %v1454_v16 = vpop.f32.mrb[49].mxu1 }
 0x3ad   : > { %v1455_v19 = vadd.f32 %v2430_v47, %v1454_v16  ;;  %v1987_v20 = vpop.f32.mrb[50].mxu1 }
 0x3ae   : > { %v1562_v23 = vadd.f32 %v1530_v11, %v1463_v15  ;;  %v1466_v24 = vadd.f32 %v1987_v20, %v2430_v47  ;;  %v1457_v25 = vpop.f32.mrb[51].mxu1 }
 0x3af   : > { %v1560_v26 = vadd.f32 %v1528_v14, %v1455_v19  ;;  %v1458_v27 = vadd.f32 %v2430_v47, %v1457_v25 }
 0x3b0   : > { %1594 = vst.msk [vmem:[%s2444_s23 + $0xb0] sm:$0xff] %vm451_vm0, %v1562_v23  ;;  %v1563_v28 = vadd.f32 %v1531_v18, %v1466_v24 }
 0x3b1   : > { %1592 = vst.msk [vmem:[%s2444_s23 + $0xa0] sm:$0xff] %vm451_vm0, %v1560_v26  ;;  %v1561_v29 = vadd.f32 %v1529_v22, %v1458_v27 }
 0x3b2   : > { %1595 = vst.msk [vmem:[%s2444_s23 + $0xb8] sm:$0xff] %vm451_vm0, %v1563_v28 }
 0x3b3   : > { %1593 = vst.msk [vmem:[%s2444_s23 + $0xa8] sm:$0xff] %vm451_vm0, %v1561_v29  ;;  %v1990_v32 = vpop.f32.mrb[52].mxu1 }
 0x3b4   : > { %v1479_v36 = vadd.f32 %v1990_v32, %v2430_v47  ;;  %v1470_v37 = vpop.f32.mrb[53].mxu1 }
 0x3b5   : > { %v1471_v40 = vadd.f32 %v2430_v47, %v1470_v37  ;;  %v1991_v41 = vpop.f32.mrb[54].mxu1 }
 0x3b6   : > { %v1566_v44 = vadd.f32 %v1534_v31, %v1479_v36  ;;  %v1482_v45 = vadd.f32 %v1991_v41, %v2430_v47  ;;  %v1473_v46 = vpop.f32.mrb[55].mxu1 }
 0x3b7   : > { %v1564_v59 = vadd.f32 %v1532_v35, %v1471_v40  ;;  %v1474_v48 = vadd.f32 %v2430_v47, %v1473_v46 }
 0x3b8   : > { %1598 = vst.msk [vmem:[%s2444_s23 + $0xd0] sm:$0xff] %vm451_vm0, %v1566_v44  ;;  %v1567_v49 = vadd.f32 %v1535_v39, %v1482_v45 }
 0x3b9   : > { %1596 = vst.msk [vmem:[%s2444_s23 + $0xc0] sm:$0xff] %vm451_vm0, %v1564_v59  ;;  %v1565_v50 = vadd.f32 %v1533_v43, %v1474_v48 }
 0x3ba   : > { %1599 = vst.msk [vmem:[%s2444_s23 + $0xd8] sm:$0xff] %vm451_vm0, %v1567_v49 }
 0x3bb   : > { %1597 = vst.msk [vmem:[%s2444_s23 + $0xc8] sm:$0xff] %vm451_vm0, %v1565_v50  ;;  %v1994_v53 = vpop.f32.mrb[56].mxu1 }
 0x3bc   : > { %v1495_v55 = vadd.f32 %v1994_v53, %v2430_v47  ;;  %v1486_v56 = vpop.f32.mrb[57].mxu1 }
 0x3bd   : > { %v1487_v61 = vadd.f32 %v2430_v47, %v1486_v56  ;;  %v1995_v62 = vpop.f32.mrb[58].mxu1 }
 0x3be   : > { %v1570_v1 = vadd.f32 %v1538_v52, %v1495_v55  ;;  %v1498_v2 = vadd.f32 %v1995_v62, %v2430_v47  ;;  %v1489_v4 = vpop.f32.mrb[59].mxu1 }
 0x3bf   : > { %v1568_v58 = vadd.f32 %v1536_v3, %v1487_v61  ;;  %v1490_v5 = vadd.f32 %v2430_v47, %v1489_v4 }
 0x3c0   : > { %1602 = vst.msk [vmem:[%s2444_s23 + $0xf0] sm:$0xff] %vm451_vm0, %v1570_v1  ;;  %v1571_v6 = vadd.f32 %v1539_v60, %v1498_v2 }
 0x3c1   : > { %1600 = vst.msk [vmem:[%s2444_s23 + $0xe0] sm:$0xff] %vm451_vm0, %v1568_v58  ;;  %v1569_v7 = vadd.f32 %v1537_v0, %v1490_v5 }
 0x3c2   : > { %1603 = vst.msk [vmem:[%s2444_s23 + $0xf8] sm:$0xff] %vm451_vm0, %v1571_v6 }
 0x3c3   : > { %1601 = vst.msk [vmem:[%s2444_s23 + $0xe8] sm:$0xff] %vm451_vm0, %v1569_v7 }
 0x3c4 PF: > { %s20_s13 = sadd.s32 1, %s2086_s13  }
 0x3c5   : > { %p17_p4 = scmp.ge.s32.totalorder %s20_s13, 4  }
 0x3c7   :  { %19 = sbr.rel (!%p17_p4) target bundleno = 1 (0x1), region = 90 }

</bundles_post_ra>
